<compile_context>
chip_gen: v7x
topology: tpu7x:2x2x1
jax: 0.10.0
libtpu: 0.0.40
codegen_flags: <defaults>
</compile_context>

<pallas_src>
import math
import numpy as np

import jax
import jax.numpy as jnp
from jax.experimental import pallas as pl
from jax.experimental.pallas import tpu as pltpu


def _pe_add_kernel(x_ref, pe_ref, o_ref):
    # x_ref / o_ref: (ts, B, D); pe_ref: (ts, 1, D) -> broadcast over batch.
    x = x_ref[...].astype(jnp.float32)
    pe = pe_ref[...].astype(jnp.float32)
    o_ref[...] = (x + pe).astype(o_ref.dtype)


def build_positional_encoding(max_len: int, d_model: int, dtype=jnp.float32):
    """Sinusoidal PE table, shape (max_len, 1, d_model), matching the torch buffer."""
    position = np.arange(max_len, dtype=np.float32)[:, None]                      # (L, 1)
    div_term = np.exp(
        np.arange(0, d_model, 2, dtype=np.float32) * (-math.log(10000.0) / d_model)
    )                                                                              # (D/2,)
    pe = np.zeros((max_len, d_model), dtype=np.float32)
    pe[:, 0::2] = np.sin(position * div_term)
    pe[:, 1::2] = np.cos(position * div_term)
    return jnp.asarray(pe[:, None, :], dtype)  # torch: unsqueeze(0).transpose(0, 1)


def _round_up(x: int, m: int) -> int:
    return ((x + m - 1) // m) * m


def positional_encoding_forward(x, pe, *, vmem_budget_bytes: int = 32 * 1024 * 1024):
    """x: (S, B, D); pe: (max_len, 1, D), max_len >= S. Returns x + pe[:S] (eval dropout)."""
    S, B, D = x.shape
    max_len = pe.shape[0]
    assert max_len >= S and pe.shape[1] == 1 and pe.shape[2] == D

    x_item = jnp.dtype(x.dtype).itemsize
    pe_item = jnp.dtype(pe.dtype).itemsize

    # ---- padded per-sequence-row VMEM footprint of one grid step ------------
    # Last two dims of every block pad to (sublane_pack, 128) in VMEM.
    sub_x = 8 * max(1, 4 // x_item)          # f32 -> 8, bf16 -> 16, int8 -> 32
    sub_pe = 8 * max(1, 4 // pe_item)
    padded_B = _round_up(B, sub_x)
    padded_D = _round_up(D, 128)
    row_bytes = (2 * padded_B * padded_D * x_item        # x block + out block
                 + sub_pe * padded_D * pe_item)          # pe block (batch dim 1 pads up)

    # Default double buffering: 2 live copies of every block.
    ts = max(1, vmem_budget_bytes // (2 * row_bytes))

    # Keep enough grid steps for pipelining (and both v7x TensorCores) once the
    # problem is a few MiB; tiny problems stay at a single step.
    total_x_bytes = S * B * D * x_item
    if total_x_bytes >= 8 * 1024 * 1024:
        min_steps = 8
    elif total_x_bytes >= 2 * 1024 * 1024:
        min_steps = 4
    else:
        min_steps = 1
    if min_steps > 1:
        ts = min(ts, max(8, _round_up(pl.cdiv(S, min_steps), 8)))
    ts = max(1, min(ts, S))

    num_blocks = pl.cdiv(S, ts)

    # Actual pipelined working set + headroom; <= 48 MiB keeps v7x (64 MiB
    # physical per TC) comfortable and is far below v5e/v6e's 128 MiB.
    vmem_needed = 2 * ts * row_bytes
    vmem_limit = int(max(min(vmem_needed + (4 << 20), 48 << 20), 16 << 20))

    return pl.pallas_call(
        _pe_add_kernel,
        out_shape=jax.ShapeDtypeStruct((S, B, D), x.dtype),
        grid_spec=pltpu.PrefetchScalarGridSpec(
            num_scalar_prefetch=0,
            grid=(num_blocks,),
            in_specs=[
                # x: full (B, D) per block, tiled over the sequence axis.
                pl.BlockSpec((ts, B, D), lambda i: (i, 0, 0)),
                # pe: same sequence-block index -> pe[:S] slicing happens via the
                # grid extent; broadcast over batch happens in-kernel.
                pl.BlockSpec((ts, 1, D), lambda i: (i, 0, 0)),
            ],
            out_specs=pl.BlockSpec((ts, B, D), lambda i: (i, 0, 0)),
        ),
        compiler_params=pltpu.CompilerParams(
            dimension_semantics=("parallel",),
            vmem_limit_bytes=vmem_limit,
        ),
    )(x, pe)


if __name__ == "__main__":
    # Small shapes consistent with the module: seq=8, batch=2, d_model=32.
    seq_len, batch, d_model, max_len = 8, 2, 32, 64

    key = jax.random.PRNGKey(0)
    x = jax.random.normal(key, (seq_len, batch, d_model), dtype=jnp.float32)
    pe = build_positional_encoding(max_len, d_model, dtype=jnp.float32)

    fwd = jax.jit(positional_encoding_forward)
    out = jax.block_until_ready(fwd(x, pe))

    # Reference (plain JAX) check of the forward semantics (eval-mode dropout = id).
    ref = x + pe[:seq_len]
    np.testing.assert_allclose(np.asarray(out), np.asarray(ref), rtol=1e-6, atol=1e-6)

    print("KERNEL_OK")
</pallas_src>

<mosaic_0001>
module attributes {stable_mosaic.version = 11 : i64} {
  func.func @_pe_add_kernel(%arg0: i32, %arg1: memref<8x2x32xf32, #tpu.memory_space<vmem>>, %arg2: memref<8x1x32xf32, #tpu.memory_space<vmem>>, %arg3: memref<8x2x32xf32, #tpu.memory_space<vmem>>) attributes {dimension_semantics = [#tpu.dimension_semantics<parallel>], iteration_bounds = array<i64: 1>, scalar_prefetch = 0 : i64, scratch_operands = 0 : i64, tpu.core_type = #tpu.core_type<tc>, window_params = [{transform_indices = @transform_0, window_bounds = array<i64: 8, 2, 32>}, {transform_indices = @transform_1, window_bounds = array<i64: 8, 1, 32>}, {transform_indices = @transform_2, window_bounds = array<i64: 8, 2, 32>}]} {
    %c0 = arith.constant 0 : index
    %c0_0 = arith.constant 0 : index
    %c0_1 = arith.constant 0 : index
    %0 = vector.load %arg1[%c0, %c0_0, %c0_1] : memref<8x2x32xf32, #tpu.memory_space<vmem>>, vector<8x2x32xf32>
    %c0_2 = arith.constant 0 : index
    %c0_3 = arith.constant 0 : index
    %c0_4 = arith.constant 0 : index
    %1 = vector.load %arg2[%c0_2, %c0_3, %c0_4] : memref<8x1x32xf32, #tpu.memory_space<vmem>>, vector<8x1x32xf32>
    %2 = vector.broadcast %1 : vector<8x1x32xf32> to vector<8x2x32xf32>
    %3 = arith.addf %0, %2 : vector<8x2x32xf32>
    %c0_5 = arith.constant 0 : index
    %c0_6 = arith.constant 0 : index
    %c0_7 = arith.constant 0 : index
    %4 = vector.load %arg3[%c0_5, %c0_6, %c0_7] : memref<8x2x32xf32, #tpu.memory_space<vmem>>, vector<8x2x32xf32>
    tpu.vector_store %arg3[%c0_5, %c0_6, %c0_7], %3 {strides = array<i32>} : memref<8x2x32xf32, #tpu.memory_space<vmem>>, vector<8x2x32xf32>,
    return
  }
  func.func @transform_0(%arg0: i32) -> (i32, i32, i32) {
    %c0_i32 = arith.constant 0 : i32
    %c0_i32_0 = arith.constant 0 : i32
    %c0_i32_1 = arith.constant 0 : i32
    return %arg0, %c0_i32, %c0_i32_0 : i32, i32, i32
  }
  func.func @transform_1(%arg0: i32) -> (i32, i32, i32) {
    %c0_i32 = arith.constant 0 : i32
    %c0_i32_0 = arith.constant 0 : i32
    %c0_i32_1 = arith.constant 0 : i32
    return %arg0, %c0_i32, %c0_i32_0 : i32, i32, i32
  }
  func.func @transform_2(%arg0: i32) -> (i32, i32, i32) {
    %c0_i32 = arith.constant 0 : i32
    %c0_i32_0 = arith.constant 0 : i32
    %c0_i32_1 = arith.constant 0 : i32
    return %arg0, %c0_i32, %c0_i32_0 : i32, i32, i32
  }
}

</mosaic_0001>

<bundles_post_ra>
// kernel: positional_encoding_forward.1
= control target key start
LH: loop header
LB: loop body
LE: loop exit
PB: predicated region body
PF: predicated region fallthrough
CT: control target
= control target key end

     0   :  { %vm84_vm0 = vcmask 254976   ;;  %s230_s0 = inlined_call_operand.vmem [shape: f32[8,2,32], index: 0, kind: input, shape index: {}]   ;;  %s231_s1 = inlined_call_operand.vmem [shape: f32[64,1,32], index: 1, kind: input, shape index: {}]   ;;  %s232_s2 = inlined_call_operand.hbm [shape: f32[8,2,32], index: 2, kind: output, shape index: {}]  }
   0x1   :  { %v12_v0 = vld [vmem:[%s230_s0] sm:$0x3]  ;;  %v13_v3 = vld [vmem:[%s230_s0 + $0x2] sm:$0x3]  ;;  %v14_v5 = vld [vmem:[%s230_s0 + $0x4] sm:$0x3] }
   0x2   :  { %v109_v1 = vld [vmem:[%s231_s1] ss:$0 sm:$0xff]  ;;  %v110_v4 = vld [vmem:[%s231_s1 + $0x1] ss:$0 sm:$0xff]  ;;  %v111_v7 = vld [vmem:[%s231_s1 + $0x2] ss:$0 sm:$0xff] }
   0x3   :  { %v76_v2 = vadd.f32 %v109_v1, %v12_v0  ;;  %v77_v6 = vadd.f32 %v110_v4, %v13_v3  ;;  %v15_v8 = vld [vmem:[%s230_s0 + $0x6] sm:$0x3]  ;;  %v112_v9 = vld [vmem:[%s231_s1 + $0x3] ss:$0 sm:$0xff]  ;;  %v78_v10 = vadd.f32 %v111_v7, %v14_v5  ;;  %v16_v12 = vld [vmem:[%s230_s0 + $0x8] sm:$0x3] }
   0x4   :  { %v79_v11 = vadd.f32 %v112_v9, %v15_v8  ;;  %v113_v13 = vld [vmem:[%s231_s1 + $0x4] ss:$0 sm:$0xff]  ;;  %v17_v14 = vld [vmem:[%s230_s0 + $0xa] sm:$0x3]  ;;  %v114_v16 = vld [vmem:[%s231_s1 + $0x5] ss:$0 sm:$0xff] }
   0x5   :  { %85 = vst.msk [vmem:[#allocation2] sm:$0x3] %vm84_vm0, %v76_v2  ;;  %86 = vst.msk [vmem:[#allocation2 + $0x2] sm:$0x3] %vm84_vm0, %v77_v6  ;;  %v80_v15 = vadd.f32 %v113_v13, %v16_v12  ;;  %v18_v17 = vld [vmem:[%s230_s0 + $0xc] sm:$0x3]  ;;  %v81_v19 = vadd.f32 %v114_v16, %v17_v14 }
   0x6   :  { %v115_v18 = vld [vmem:[%s231_s1 + $0x6] ss:$0 sm:$0xff]  ;;  %87 = vst.msk [vmem:[#allocation2 + $0x4] sm:$0x3] %vm84_vm0, %v78_v10  ;;  %88 = vst.msk [vmem:[#allocation2 + $0x6] sm:$0x3] %vm84_vm0, %v79_v11 }
   0x7   :  { %v82_v20 = vadd.f32 %v115_v18, %v18_v17  ;;  %v19_v21 = vld [vmem:[%s230_s0 + $0xe] sm:$0x3]  ;;  %v116_v22 = vld [vmem:[%s231_s1 + $0x7] ss:$0 sm:$0xff] }
   0x8   :  { %7 = vsyncpa [#allocation3], 0  ;;  %89 = vst.msk [vmem:[#allocation2 + $0x8] sm:$0x3] %vm84_vm0, %v80_v15  ;;  %v83_v23 = vadd.f32 %v116_v22, %v19_v21  ;;  %s144_s13 = smov [#allocation2]  }
   0x9   :  { %s98_s14 = sshll.u32 %s144_s13, 4  ;;  %90 = vst.msk [vmem:[#allocation2 + $0xa] sm:$0x3] %vm84_vm0, %v81_v19  ;;  %91 = vst.msk [vmem:[#allocation2 + $0xc] sm:$0x3] %vm84_vm0, %v82_v20  ;;  %s99_s14 = int_to_ptr.vmem [resolvable:$true] %s98_s14 }
   0xa   :  { %92 = vst.msk [vmem:[#allocation2 + $0xe] sm:$0x3] %vm84_vm0, %v83_v23  ;;  %s120_s15 = scalar_lea.vmem %s99_s14, 256  ;;  %p125_p1 = scmp.lt.s32.totalorder %s99_s14, %s99_s14 }
   0xb   :  { %p121_p0 = scmp.ne.s32.totalorder %s99_s14, %s120_s15  ;;  %p126_p2 = scmp.lt.s32.totalorder %s120_s15, %s120_s15 }
   0xd   :  { %p127_p3 = por %p126_p2, %p125_p1 }
   0xf   :  { %p128_p4 = pnand %p127_p3, %p121_p0 }
  0x11   :  { %131 = shalt.err (!%p128_p4)
}
  0x12   :  { %s132_s16 = scalar_lea.hbm %s232_s2, 256 }
  0x13   :  { %p133_p5 = scmp.ne.s32.totalorder %s232_s2, %s132_s16  ;;  %p136_p6 = scmp.lt.u32.totalorder %s132_s16, %s232_s2 }
  0x15   :  { %p138_p7 = pnand %p136_p6, %p133_p5 }
  0x17   :  { %141 = shalt.err (!%p138_p7)
}
  0x18   :  { %s145_s21 = smov 32   ;;  %s146_s22 = smov 2  }
  0x19   :  { %104 = dma.vmem_to_hbm [thread:$0]  %s99_s14, 256, %s232_s2, [#allocation3], %s145_s21, %s145_s21, %s146_s22  }
  0x1a   :  { %142 = dma.done.wait [#allocation3], 256  }
  0x1b   :  { %143 = vsyncadd [#allocation3], 4294967040 }
  0x1c   :  { %108 = vsyncpa [#allocation3], 1 }

</bundles_post_ra>
